<compile_context>
chip_gen: v7x
topology: tpu7x:2x2x1
jax: 0.10.0
libtpu: 0.0.40
codegen_flags: <defaults>
</compile_context>

<pallas_src>
from functools import partial

import jax
import jax.numpy as jnp
from jax.experimental import pallas as pl
from jax.experimental.pallas import tpu as pltpu


def _make_divisible(v, divisor=8, min_value=None):
    if min_value is None:
        min_value = divisor
    new_v = max(min_value, int(v + divisor / 2) // divisor * divisor)
    if new_v < 0.9 * v:
        new_v += divisor
    return new_v


def _silu(x):
    return x * jax.nn.sigmoid(x)


# ----------------------- pltpu.roll convention probe ------------------------
# One-time calibration so the depthwise shift direction is correct regardless of
# which rotation convention this JAX/Mosaic build uses for pltpu.roll.
_ROLL_CONVENTION = {}


def _pltpu_roll_is_np_convention():
    """True iff pltpu.roll matches np.roll (out[i] = x[(i - shift) % n])."""
    if 'np_roll' not in _ROLL_CONVENTION:
        n = 128
        x = jnp.tile(jnp.arange(n, dtype=jnp.float32)[None, :], (8, 1))

        def kernel(x_ref, o_ref):
            o_ref[...] = pltpu.roll(x_ref[...], 1, axis=1)

        y = pl.pallas_call(
            kernel, out_shape=jax.ShapeDtypeStruct((8, n), jnp.float32))(x)
        _ROLL_CONVENTION['np_roll'] = bool(y[0, 0] == n - 1)
    return _ROLL_CONVENTION['np_roll']


def _choose_channel_chunk(cexp, hw):
    """Sublane (channel) chunk for the depthwise tap loop: target ~4 f32 vregs per
    (chunk, hw) tile so the 9-tap live set stays ~20-24 vregs (no spills); must be
    a multiple of 8 and divide cexp (cexp is always a multiple of 8)."""
    ch = (4 * 8 * 128) // max(hw, 1)
    ch = max(8, min(cexp, (ch // 8) * 8))
    while cexp % ch:
        ch -= 8
    return max(ch, 8)


# ------------------------------ fused kernel --------------------------------

def _mbconv_fused_kernel(*refs, has_expand, use_res, K, H, W, np_roll, ch_chunk):
    if has_expand:
        (x_ref, w_exp_ref, b1_ref, w_dw_ref, b2_ref,
         se_w1_ref, se_b1_ref, se_w2_ref, se_b2_ref,
         w_proj_ref, b3_ref, o_ref, h_sc, hb_sc, pool_sc) = refs
    else:
        (x_ref, w_dw_ref, b2_ref,
         se_w1_ref, se_b1_ref, se_w2_ref, se_b2_ref,
         w_proj_ref, b3_ref, o_ref, h_sc, hb_sc, pool_sc) = refs

    cexp, HW = h_sc.shape
    pad = (K - 1) // 2
    n_chunks = cexp // ch_chunk

    # ---- 1) expand 1x1 conv (bf16 x bf16 -> f32 acc on the MXU) + bias + SiLU
    if has_expand:
        x16 = x_ref[0].astype(jnp.bfloat16)
        h1 = jnp.dot(w_exp_ref[...], x16, preferred_element_type=jnp.float32)
        h_sc[...] = _silu(h1 + b1_ref[...])                   # (cexp, HW) f32
    else:
        h_sc[...] = x_ref[0].astype(jnp.float32)

    # ---- 2) depthwise KxK 'same' conv + bias + SiLU, chunked over channels --
    # Shifted neighbours = lane rotations (XLU) of the flattened H*W axis; iota
    # masks kill wraps across row / image edges.  Column-shifted, col-masked
    # copies are built once per chunk and reused for every kernel row.
    pos = jax.lax.broadcasted_iota(jnp.int32, (1, HW), 1)
    if W & (W - 1) == 0:                                      # power-of-two fast path
        row = pos >> (W.bit_length() - 1)
        col = pos & (W - 1)
    else:
        row = pos // W
        col = pos % W

    col_masks, row_masks = {}, {}
    for k in range(K):
        d = k - pad
        if d != 0:
            col_masks[d] = jnp.logical_and(col + d >= 0, col + d < W)
            row_masks[d] = jnp.logical_and(row + d >= 0, row + d < H)

    def dw_chunk(ci, carry):
        start = pl.multiple_of(ci * ch_chunk, ch_chunk)
        csl = pl.ds(start, ch_chunk)
        hc = h_sc[csl, :]                                     # (CH, HW) f32
        # K column-shifted, column-masked copies (shared across kernel rows).
        cols = []
        for kw in range(K):
            dw = kw - pad
            if dw == 0:
                cols.append(hc)
            else:
                shift = ((-dw) if np_roll else dw) % HW
                cols.append(jnp.where(col_masks[dw],
                                      pltpu.roll(hc, shift, axis=1), 0.0))
        acc = jnp.zeros_like(hc)
        for kh in range(K):
            dh = kh - pad
            rowacc = None
            for kw in range(K):
                tap = kh * K + kw
                w_tap = w_dw_ref[csl, tap:tap + 1]            # (CH, 1) lane-broadcast
                src = cols[kw]
                if dh != 0:
                    shift = ((-dh * W) if np_roll else dh * W) % HW
                    src = pltpu.roll(src, shift, axis=1)
                term = src * w_tap
                rowacc = term if rowacc is None else rowacc + term
            if dh != 0:
                rowacc = jnp.where(row_masks[dh], rowacc, 0.0)
            acc = acc + rowacc
        hn = _silu(acc + b2_ref[csl, :])                      # (CH, HW)
        h_sc[csl, :] = hn                                     # in-place (per-channel op)
        pool_sc[csl, :] = jnp.sum(hn, axis=1, keepdims=True)  # partial global pool
        return carry

    jax.lax.fori_loop(0, n_chunks, dw_chunk, 0, unroll=True)

    # ---- 3) squeeze-and-excitation (pool -> fc1 -> SiLU -> fc2 -> sigmoid) --
    # csq is tiny -> broadcast+reduce on VPU/XLU, not the MXU.
    s = pool_sc[...] * (1.0 / HW)                                            # (cexp, 1)
    t = _silu(jnp.sum(se_w1_ref[...] * s, axis=0, keepdims=True) + se_b1_ref[...])  # (1, csq)
    g = jnp.sum(se_w2_ref[...] * t, axis=1, keepdims=True) + se_b2_ref[...]         # (cexp, 1)
    pool_sc[...] = jax.nn.sigmoid(g)                          # reuse scratch as gate

    # Gate application + bf16 cast of the projection operand, chunked as well.
    def gate_chunk(ci, carry):
        start = pl.multiple_of(ci * ch_chunk, ch_chunk)
        csl = pl.ds(start, ch_chunk)
        hb_sc[csl, :] = (h_sc[csl, :] * pool_sc[csl, :]).astype(jnp.bfloat16)
        return carry

    jax.lax.fori_loop(0, n_chunks, gate_chunk, 0, unroll=True)

    # ---- 4) project 1x1 conv (bf16 MXU, f32 acc) + bias [+ residual] --------
    y = jnp.dot(w_proj_ref[...], hb_sc[...], preferred_element_type=jnp.float32)
    y = y + b3_ref[...]                                       # (cout, HW)
    if use_res:
        # StochasticDepth('row') is identity in eval mode -> plain residual add.
        # Re-read x from the (VMEM-resident) ref instead of carrying it live.
        y = y + x_ref[0].astype(jnp.float32)
    o_ref[0] = y.astype(o_ref.dtype)


# -------------------------------- wrapper ------------------------------------

def mbconv_forward(x_nchw, fp, *, stride=1):
    """Fused MBConv forward. `fp` comes from prepare_fused_params(). NCHW in/out."""
    if stride != 1:
        # TODO(synk): stride=2 depthwise downsampling path not implemented.
        raise NotImplementedError("only stride=1 is implemented")
    N, C, H, W = x_nchw.shape
    cin, cout, cexp, K = fp['cin'], fp['cout'], fp['cexp'], fp['kernel']
    assert C == cin
    HW = H * W
    use_res = (stride == 1 and cin == cout)
    has_expand = (cexp != cin)
    np_roll = _pltpu_roll_is_np_convention()
    ch_chunk = _choose_channel_chunk(cexp, HW)

    x3 = x_nchw.reshape(N, cin, HW)       # NCHW flattened: already lane-dense

    args = [x3]
    in_specs = [pl.BlockSpec((1, cin, HW), lambda n: (n, 0, 0))]

    def add_const(arr):                    # whole-array block, resident across steps
        nd = arr.ndim
        args.append(arr)
        in_specs.append(pl.BlockSpec(arr.shape, lambda n: (0,) * nd))

    if has_expand:
        add_const(fp['w_expT'])            # (cexp, cin)  bf16
        add_const(fp['b1'])                # (cexp, 1)    f32
    for name in ('w_dw', 'b2', 'se_w1', 'se_b1', 'se_w2T', 'se_b2', 'w_projT', 'b3'):
        add_const(fp[name])

    kernel = partial(_mbconv_fused_kernel, has_expand=has_expand, use_res=use_res,
                     K=K, H=H, W=W, np_roll=np_roll, ch_chunk=ch_chunk)

    out3 = pl.pallas_call(
        kernel,
        out_shape=jax.ShapeDtypeStruct((N, cout, HW), x_nchw.dtype),
        grid=(N,),
        in_specs=in_specs,
        out_specs=pl.BlockSpec((1, cout, HW), lambda n: (n, 0, 0)),
        scratch_shapes=[
            pltpu.VMEM((cexp, HW), jnp.float32),    # expanded activation (resident)
            pltpu.VMEM((cexp, HW), jnp.bfloat16),   # gated bf16 projection operand
            pltpu.VMEM((cexp, 1), jnp.float32),     # per-image pool / channel gate
        ],
        compiler_params=pltpu.CompilerParams(
            dimension_semantics=("parallel",),
            # 48 MiB is safe on v7x (64 MiB physical VMEM); raise toward ~96-112 MiB
            # on v5e/v6e for production-sized spatial tiles.
            vmem_limit_bytes=48 * 1024 * 1024,
        ),
    )(*args)
    return out3.reshape(N, cout, H, W)     # (N, C, H*W) IS NCHW: no transpose


# --------------------------- parameters / prep -------------------------------

def _fuse_bn(gamma, beta, mean, var, eps=1e-5):
    scale = gamma / jnp.sqrt(var + eps)
    bias = beta - mean * scale
    return scale.reshape(1, -1), bias.reshape(1, -1)


def init_mbconv_params(key, cin, cout, expand_ratio, kernel_size):
    cexp = _make_divisible(cin * expand_ratio, 8)
    csq = max(1, cin // 4)
    ks = jax.random.split(key, 10)

    def bn(k, c):
        k1, k2, k3, k4 = jax.random.split(k, 4)
        gamma = jax.random.uniform(k1, (c,), jnp.float32, 0.5, 1.5)
        beta = 0.1 * jax.random.normal(k2, (c,), jnp.float32)
        mean = 0.1 * jax.random.normal(k3, (c,), jnp.float32)
        var = jax.random.uniform(k4, (c,), jnp.float32, 0.5, 1.5)
        return gamma, beta, mean, var

    p = dict(cin=cin, cout=cout, cexp=cexp, csq=csq, kernel=kernel_size)
    p['w_exp'] = 0.1 * jax.random.normal(ks[0], (cin, cexp), jnp.float32)
    p['s1'], p['b1'] = _fuse_bn(*bn(ks[1], cexp))
    p['w_dw'] = 0.1 * jax.random.normal(ks[2], (kernel_size, kernel_size, cexp), jnp.float32)
    p['s2'], p['b2'] = _fuse_bn(*bn(ks[3], cexp))
    p['se_w1'] = 0.1 * jax.random.normal(ks[4], (cexp, csq), jnp.float32)
    p['se_b1'] = 0.1 * jax.random.normal(ks[5], (1, csq), jnp.float32)
    p['se_w2'] = 0.1 * jax.random.normal(ks[6], (csq, cexp), jnp.float32)
    p['se_b2'] = 0.1 * jax.random.normal(ks[7], (1, cexp), jnp.float32)
    p['w_proj'] = 0.1 * jax.random.normal(ks[8], (cexp, cout), jnp.float32)
    p['s3'], p['b3'] = _fuse_bn(*bn(ks[9], cout))
    return p


def prepare_fused_params(p):
    """Fold eval-mode BN scales into the conv weights; store the 1x1-conv weights in
    bf16 (MXU-native operands) and everything else in the lane-dense orientation
    the fused kernel expects."""
    cexp, cout, cin, csq, K = p['cexp'], p['cout'], p['cin'], p['csq'], p['kernel']
    s1, b1 = p['s1'][0], p['b1'][0]
    s2, b2 = p['s2'][0], p['b2'][0]
    s3, b3 = p['s3'][0], p['b3'][0]
    fp = dict(cin=cin, cout=cout, cexp=cexp, csq=csq, kernel=K)
    fp['w_expT'] = (p['w_exp'] * s1[None, :]).T.astype(jnp.bfloat16)       # (cexp, cin)
    fp['b1'] = b1[:, None]                                                 # (cexp, 1)
    # Depthwise weights: (cexp, K*K) lane layout (K*K pads 9->128, ~32 KB vs ~288 KB
    # for the old (K*K, cexp, 1) layout); taps are static lane-column slices.
    fp['w_dw'] = (p['w_dw'] * s2[None, None, :]).reshape(K * K, cexp).T    # (cexp, K*K)
    fp['b2'] = b2[:, None]                                                 # (cexp, 1)
    fp['se_w1'] = p['se_w1']                                               # (cexp, csq)
    fp['se_b1'] = p['se_b1']                                               # (1, csq)
    fp['se_w2T'] = p['se_w2'].T                                            # (cexp, csq)
    fp['se_b2'] = p['se_b2'].reshape(-1, 1)                                # (cexp, 1)
    fp['w_projT'] = (p['w_proj'] * s3[None, :]).T.astype(jnp.bfloat16)     # (cout, cexp)
    fp['b3'] = b3[:, None]                                                 # (cout, 1)
    return fp


# ------------------------------- reference -----------------------------------

def mbconv_reference(x_nchw, p, *, stride=1):
    """Pure-JAX/XLA reference of the same eval-mode MBConv forward.  The 1x1 convs
    use bf16 operands with f32 accumulation (matching the kernel's MXU path); all
    other math is f32."""
    hp = jax.lax.Precision.HIGHEST
    x = jnp.transpose(x_nchw, (0, 2, 3, 1))
    dn = ('NHWC', 'HWIO', 'NHWC')
    cexp, cout, cin, K = p['cexp'], p['cout'], p['cin'], p['kernel']
    s1, b1 = p['s1'][0], p['b1'][0]
    s2, b2 = p['s2'][0], p['b2'][0]
    s3, b3 = p['s3'][0], p['b3'][0]
    h = x
    if cexp != cin:
        w1 = (p['w_exp'] * s1[None, :]).astype(jnp.bfloat16).reshape(1, 1, cin, cexp)
        h = jax.lax.conv_general_dilated(
            h.astype(jnp.bfloat16), w1, (1, 1), 'VALID', dimension_numbers=dn,
            preferred_element_type=jnp.float32, precision=hp)
        h = _silu(h + b1)
    wdw = (p['w_dw'] * s2[None, None, :]).reshape(K, K, 1, cexp)
    h = jax.lax.conv_general_dilated(h, wdw, (stride, stride), 'SAME',
                                     dimension_numbers=dn, feature_group_count=cexp,
                                     precision=hp)
    h = _silu(h + b2)
    s = jnp.mean(h, axis=(1, 2))
    g = _silu(jnp.dot(s, p['se_w1'], precision=hp) + p['se_b1'])
    g = jax.nn.sigmoid(jnp.dot(g, p['se_w2'], precision=hp) + p['se_b2'])
    h = h * g[:, None, None, :]
    wp = (p['w_proj'] * s3[None, :]).astype(jnp.bfloat16).reshape(1, 1, cexp, cout)
    o = jax.lax.conv_general_dilated(
        h.astype(jnp.bfloat16), wp, (1, 1), 'VALID', dimension_numbers=dn,
        preferred_element_type=jnp.float32, precision=hp)
    o = o + b3
    if stride == 1 and cin == cout:
        o = o + x
    return jnp.transpose(o, (0, 3, 1, 2))


if __name__ == "__main__":
    key = jax.random.PRNGKey(0)
    k_x, k_p = jax.random.split(key)

    # MBConvConfig(expand_ratio=4.0, kernel=3, stride=1, input_channels=16,
    #              out_channels=16) -> expanded=64, squeeze=4, residual used.
    N, C, H, W = 2, 16, 16, 16
    x = jax.random.normal(k_x, (N, C, H, W), jnp.float32)        # NCHW, like PyTorch
    raw_params = init_mbconv_params(k_p, cin=C, cout=C, expand_ratio=4.0, kernel_size=3)
    fused_params = prepare_fused_params(raw_params)

    out = mbconv_forward(x, fused_params, stride=1)
    out = jax.block_until_ready(out)

    ref = mbconv_reference(x, raw_params, stride=1)
    assert out.shape == (N, C, H, W)
    max_err = float(jnp.max(jnp.abs(out - ref)))
    # bf16 MXU operands (mirrored in the reference) -> relaxed tolerance vs pure f32.
    assert bool(jnp.allclose(out, ref, rtol=1e-2, atol=1e-2)), (
        f"mismatch vs JAX reference (max abs err = {max_err:.3e})")
    print("KERNEL_OK")
</pallas_src>

<mosaic_0001>
module attributes {stable_mosaic.version = 11 : i64} {
  func.func @kernel(%arg0: memref<8x128xf32, #tpu.memory_space<vmem>>, %arg1: memref<8x128xf32, #tpu.memory_space<vmem>>) attributes {dimension_semantics = [], scalar_prefetch = 0 : i64, scratch_operands = 0 : i64, tpu.core_type = #tpu.core_type<tc>} {
    %c0 = arith.constant 0 : index
    %c0_0 = arith.constant 0 : index
    %0 = vector.load %arg0[%c0, %c0_0] : memref<8x128xf32, #tpu.memory_space<vmem>>, vector<8x128xf32>
    %c1_i32 = arith.constant 1 : i32
    %1 = tpu.dynamic_rotate %0 by %c1_i32 dim 1 : vector<8x128xf32>, i32 -> vector<8x128xf32>
    %c0_1 = arith.constant 0 : index
    %c0_2 = arith.constant 0 : index
    %2 = vector.load %arg1[%c0_1, %c0_2] : memref<8x128xf32, #tpu.memory_space<vmem>>, vector<8x128xf32>
    tpu.vector_store %arg1[%c0_1, %c0_2], %1 {strides = array<i32>} : memref<8x128xf32, #tpu.memory_space<vmem>>, vector<8x128xf32>,
    return
  }
}

</mosaic_0001>

<bundles_post_ra>
// kernel: tpu_custom_call.1
= control target key start
LH: loop header
LB: loop body
LE: loop exit
PB: predicated region body
PF: predicated region fallthrough
CT: control target
= control target key end

     0   :  { %6 = vsyncpa [#allocation3], 0  ;;  %s128_s0 = inlined_call_operand.hbm [shape: f32[8,128], index: 0, kind: input, shape index: {}]   ;;  %s129_s1 = inlined_call_operand.hbm [shape: f32[8,128], index: 1, kind: output, shape index: {}]  }
   0x1   :  { %7 = vsyncpa [#allocation4], 0  ;;  %s91_s6 = smov [#allocation2]   ;;  %s43_s10 = scalar_lea.hbm %s128_s0, 128 }
   0x2   :  { %s14_s7 = sshll.u32 %s91_s6, 4  ;;  %p44_p0 = scmp.ne.s32.totalorder %s128_s0, %s43_s10  ;;  %s15_s7 = int_to_ptr.vmem [resolvable:$true] %s14_s7 }
   0x3   :  { %p47_p1 = scmp.lt.u32.totalorder %s43_s10, %s128_s0 }
   0x5   :  { %p49_p2 = pnand %p47_p1, %p44_p0 }
   0x7   :  { %52 = shalt.err (!%p49_p2)
}
   0x8   :  { %s53_s15 = scalar_lea.vmem %s15_s7, 128  ;;  %p58_p4 = scmp.lt.s32.totalorder %s15_s7, %s15_s7 }
   0x9   :  { %p54_p3 = scmp.ne.s32.totalorder %s15_s7, %s53_s15  ;;  %p59_p5 = scmp.lt.s32.totalorder %s53_s15, %s53_s15 }
   0xb   :  { %p60_p6 = por %p59_p5, %p58_p4 }
   0xd   :  { %p61_p7 = pnand %p60_p6, %p54_p3 }
   0xf   :  { %64 = shalt.err (!%p61_p7)
}
  0x10   :  { %17 = dma.hbm_to_vmem [thread:$0]  %s128_s0, 128, %s15_s7, [#allocation3]  }
  0x11   :  { %87 = dma.done.wait [#allocation3], 128  }
  0x12   :  { %88 = vsyncadd [#allocation3], 4294967168  ;;  %v21_v0 = vld [vmem:[#allocation2] sm:$0xff]  ;;  %s92_s18 = smov 1   ;;  %s93_s19 = smov [#allocation5]  }
  0x13   :  { %22 = vrot.lane.b32.xlu0 %v21_v0, %s92_s18  ;;  %s31_s20 = sshll.u32 %s93_s19, 4  ;;  %s32_s20 = int_to_ptr.vmem [resolvable:$true] %s31_s20 }
  0x14   :  { %s65_s21 = scalar_lea.vmem %s32_s20, 128  ;;  %p70_p9 = scmp.lt.s32.totalorder %s32_s20, %s32_s20 }
  0x15   :  { %p66_p8 = scmp.ne.s32.totalorder %s32_s20, %s65_s21  ;;  %p71_p10 = scmp.lt.s32.totalorder %s65_s21, %s65_s21 }
  0x17   :  { %p72_p11 = por %p71_p10, %p70_p9 }
  0x19   :  { %p73_p12 = pnand %p72_p11, %p66_p8 }
  0x85   :  { %v23_v1 = vpop.permute.xlu0 %22 }
  0x86   :  { %24 = vst [vmem:[#allocation5] sm:$0xff] %v23_v1 }
  0x87   :  { %76 = shalt.err (!%p73_p12)
}
  0x88   :  { %s77_s0 = scalar_lea.hbm %s129_s1, 128 }
  0x89   :  { %p78_p13 = scmp.ne.s32.totalorder %s129_s1, %s77_s0  ;;  %p81_p0 = scmp.lt.u32.totalorder %s77_s0, %s129_s1 }
  0x8b   :  { %p83_p1 = pnand %p81_p0, %p78_p13 }
  0x8d   :  { %86 = shalt.err (!%p83_p1)
}
  0x8e   :  { %34 = dma.vmem_to_hbm [thread:$0]  %s32_s20, 128, %s129_s1, [#allocation4]  }
  0x8f   :  { %89 = dma.done.wait [#allocation4], 128  }
  0x90   :  { %90 = vsyncadd [#allocation4], 4294967168 }
  0x91   :  { %38 = vsyncpa [#allocation3], 1 }
  0x92   :  { %39 = vsyncpa [#allocation4], 1 }

</bundles_post_ra>
